<compile_context>
chip_gen: v7x
topology: tpu7x:2x2x1
jax: 0.10.0
libtpu: 0.0.40
codegen_flags: <defaults>
</compile_context>

<pallas_src>
import jax
import jax.numpy as jnp
from jax.experimental import pallas as pl
from jax.experimental.pallas import tpu as pltpu


def _identity_copy_kernel(x_hbm_ref, o_hbm_ref, copy_sem):
    # Whole-ref HBM->HBM DMA: read x once, write o once (2*n*itemsize bytes,
    # the minimum for a physically materialized copy).  A copy has no compute
    # to overlap, so a BlockSpec double-buffered pipeline buys nothing; a
    # direct DMA descriptor is the cheapest form on every TPU generation.
    cp = pltpu.make_async_copy(x_hbm_ref, o_hbm_ref, copy_sem)
    cp.start()
    cp.wait()


def _identity_copy(x: jax.Array) -> jax.Array:
    """Opt-in: materialize a fresh buffer holding exactly x (one HBM->HBM DMA)."""
    if x.size == 0:
        return x
    # 0-d arrays: give the DMA a 1-element rank-1 view (trivial reshape).
    squeeze_back = x.ndim == 0
    x_in = x.reshape(1) if squeeze_back else x

    itemsize = jnp.dtype(x.dtype).itemsize
    out = pl.pallas_call(
        _identity_copy_kernel,
        out_shape=jax.ShapeDtypeStruct(x_in.shape, x_in.dtype),
        in_specs=[pl.BlockSpec(memory_space=pl.ANY)],   # leave in HBM, no auto-DMA
        out_specs=pl.BlockSpec(memory_space=pl.ANY),    # leave in HBM, no auto-DMA
        scratch_shapes=[pltpu.SemaphoreType.DMA(())],
        # Pure mem-bound op: one read + one write of the whole tensor.
        cost_estimate=pl.CostEstimate(
            flops=0, transcendentals=0, bytes_accessed=2 * x.size * itemsize),
    )(x_in)
    return out.reshape(x.shape) if squeeze_back else out


def identity(x: jax.Array, *, materialize: bool = False) -> jax.Array:
    """Pallas port of Identity.forward(x) -> x.

    Default: metadata-only `return x` (zero HBM traffic, zero compute) — the
    exact semantics of the PyTorch module and its performance floor.  No
    input_output_aliases trick can beat this: without donation an aliased
    kernel forces a defensive copy, and with donation `return x` under jit is
    already zero-copy.

    materialize=True: run the opt-in Pallas kernel that produces a distinct,
    freshly written buffer with the same contents (single HBM->HBM DMA).
    """
    if materialize:
        return _identity_copy(x)
    return x


if __name__ == "__main__":
    key = jax.random.PRNGKey(0)
    # Identity has no parameters; an example NCHW activation tensor.
    x = jax.random.normal(key, (2, 4, 16, 16), dtype=jnp.float32)

    # Default (production) path: metadata-only, zero HBM traffic.
    y = identity(x)
    jax.block_until_ready(y)
    assert y.shape == x.shape and y.dtype == x.dtype
    assert bool(jnp.all(y == x))

    # Opt-in kernel path: single HBM->HBM DMA copy, no VMEM bounce, no grid.
    y2 = identity(x, materialize=True)
    jax.block_until_ready(y2)
    assert y2.shape == x.shape and y2.dtype == x.dtype
    assert bool(jnp.all(y2 == x))

    # Ragged / non-tile-aligned shape goes through the very same DMA path
    # (no pad / slice round trips, no (8,128) alignment requirement).
    x3 = jax.random.normal(jax.random.PRNGKey(0), (3, 5, 7), dtype=jnp.float32)
    y3 = identity(x3, materialize=True)
    jax.block_until_ready(y3)
    assert y3.shape == x3.shape and y3.dtype == x3.dtype
    assert bool(jnp.all(y3 == x3))

    print("KERNEL_OK")
</pallas_src>

<mosaic_0001>
module attributes {stable_mosaic.version = 11 : i64} {
  func.func @_identity_copy_kernel(%arg0: memref<2x4x16x16xf32, #tpu.memory_space<any>>, %arg1: memref<2x4x16x16xf32, #tpu.memory_space<any>>, %arg2: memref<!tpu.dma_semaphore, #tpu.memory_space<semaphore_mem>>) attributes {dimension_semantics = [], scalar_prefetch = 0 : i64, scratch_operands = 1 : i64, tpu.core_type = #tpu.core_type<tc>} {
    tpu.enqueue_dma source(%arg0 : memref<2x4x16x16xf32, #tpu.memory_space<any>>) target(%arg1 : memref<2x4x16x16xf32, #tpu.memory_space<any>>) target_semaphore(%arg2 : memref<!tpu.dma_semaphore, #tpu.memory_space<semaphore_mem>>)
    tpu.wait_dma2 semaphore(%arg2 : memref<!tpu.dma_semaphore, #tpu.memory_space<semaphore_mem>>) src(%arg0 : memref<2x4x16x16xf32, #tpu.memory_space<any>>) dst(%arg1 : memref<2x4x16x16xf32, #tpu.memory_space<any>>)
    return
  }
}

</mosaic_0001>

<bundles_post_ra>
// kernel: tpu_custom_call.1
= control target key start
LH: loop header
LB: loop body
LE: loop exit
PB: predicated region body
PF: predicated region fallthrough
CT: control target
= control target key end

     0   :  { %s36_s6 = smov [#allocation2]   ;;  %s37_s7 = smov [#allocation3]   ;;  %s55_s0 = inlined_call_operand.hbm [shape: f32[2,4,16,16], index: 0, kind: input, shape index: {}]   ;;  %s56_s1 = inlined_call_operand.hbm [shape: f32[2,4,16,16], index: 1, kind: output, shape index: {}]  }
   0x1   :  { %s38_s8 = smov 0  }
   0x2   :  { %18 = dma.general %s55_s0, 2048, %s56_s1, %s36_s6, %s37_s7, [#allocation4], %s38_s8, 0  }
   0x3   :  { %34 = dma.done.wait [#allocation2], 2048 }
   0x4   :  { %35 = vsyncadd [#allocation2], 4294965248 }
   0x5   :  { %24 = vsyncmov [#allocation2] }
   0x8   :  { %s25_s13 = vpop.sfrf %24 }
   0x9   :  { %p30_p0 = scmp.ne.s32.totalorder %s25_s13, 0 }
   0xb   :  { %29 = shalt.err (%p30_p0)  }

</bundles_post_ra>
